<compile_context>
chip_gen: v7x
topology: tpu7x:2x2x1
jax: 0.10.0
libtpu: 0.0.40
codegen_flags: <defaults>
</compile_context>

<pallas_src>
import functools

import jax
import jax.numpy as jnp
from jax.experimental import pallas as pl
from jax.experimental.pallas import tpu as pltpu

_H = 128  # padded hidden / merged-head width (lane dimension)


def _round_up(n, m):
    return ((n + m - 1) // m) * m


def _mlp_kernel(x_ref, w1_ref, w2_ref, wh_ref, b_ref, out_ref, *, input_dim):
    x = x_ref[...]          # (TB, input_dim) f32 -- unpadded feature dim
    w1 = w1_ref[...]        # (8, 128)  rows 0..input_dim-1 are real
    b = b_ref[...]          # (8, 128): row 0 = b1, row 1 = b2, row 2 = b_head

    # Layer 1: K == input_dim (tiny) -> broadcast FMAs on the VPU, no MXU pass.
    h = x[:, 0:1] * w1[0:1, :]
    for i in range(1, input_dim):
        h = h + x[:, i:i + 1] * w1[i:i + 1, :]
    h = jnp.maximum(h + b[0:1, :], 0.0)

    # Layer 2: single 128x128 MXU matmul.
    h = jnp.dot(h, w2_ref[...], preferred_element_type=jnp.float32)
    h = jnp.maximum(h + b[1:2, :], 0.0)

    # Merged policy+value head: one matmul, one lane-dense output writeback.
    out_ref[...] = (
        jnp.dot(h, wh_ref[...], preferred_element_type=jnp.float32) + b[2:3, :]
    )


def pack_params(params, *, input_dim=2, hidden_dim=64, action_dim=4):
    """One-time packing/padding of parameters (call at init / after each
    optimizer step, NOT inside the per-step forward)."""
    w1, b1, w2, b2, wp, bp, wv, bv = params
    f32 = jnp.float32

    w1_p = jnp.zeros((8, _H), f32).at[:input_dim, :hidden_dim].set(w1.astype(f32))
    w2_p = jnp.zeros((_H, _H), f32).at[:hidden_dim, :hidden_dim].set(w2.astype(f32))

    # Merged head: columns 0..action_dim-1 = policy, column action_dim = value.
    wh_p = (
        jnp.zeros((_H, _H), f32)
        .at[:hidden_dim, :action_dim].set(wp.astype(f32))
        .at[:hidden_dim, action_dim:action_dim + 1].set(wv.astype(f32))
    )

    b_p = (
        jnp.zeros((8, _H), f32)
        .at[0, :hidden_dim].set(b1.astype(f32))
        .at[1, :hidden_dim].set(b2.astype(f32))
        .at[2, :action_dim].set(bp.astype(f32))
        .at[2, action_dim].set(bv.astype(f32)[0])
    )
    return (w1_p, w2_p, wh_p, b_p)


@functools.partial(jax.jit, static_argnames=("input_dim", "hidden_dim", "action_dim"))
def policy_value_forward(x, packed_params, *, input_dim=2, hidden_dim=64, action_dim=4):
    """x: (B, input_dim) f32, packed_params from pack_params()
       -> (logits (B, action_dim), value (B, 1))."""
    del hidden_dim  # padded widths are fixed at 128 inside the kernel
    w1_p, w2_p, wh_p, b_p = packed_params
    B = x.shape[0]

    # Batch tiling: one block for small B; 512-row tiles + parallel grid for
    # large rollouts (feeds the wide MXU and v7x's two TensorCores).
    BP = max(8, _round_up(B, 8))
    if BP > 512:
        TB = 512
        BP = _round_up(BP, TB)
    else:
        TB = BP
    grid = (BP // TB,)

    x_p = x.astype(jnp.float32)
    if BP != B:
        x_p = jnp.pad(x_p, ((0, BP - B), (0, 0)))

    kernel = functools.partial(_mlp_kernel, input_dim=input_dim)

    out_p = pl.pallas_call(
        kernel,
        out_shape=jax.ShapeDtypeStruct((BP, _H), jnp.float32),
        grid=grid,
        in_specs=[
            pl.BlockSpec((TB, input_dim), lambda i: (i, 0)),  # x: batch-tiled
            pl.BlockSpec((8, _H), lambda i: (0, 0)),          # w1 (resident)
            pl.BlockSpec((_H, _H), lambda i: (0, 0)),         # w2 (resident)
            pl.BlockSpec((_H, _H), lambda i: (0, 0)),         # merged head (resident)
            pl.BlockSpec((8, _H), lambda i: (0, 0)),          # packed biases (resident)
        ],
        out_specs=pl.BlockSpec((TB, _H), lambda i: (i, 0)),
        compiler_params=pltpu.CompilerParams(dimension_semantics=("parallel",)),
    )(x_p, w1_p, w2_p, wh_p, b_p)

    logits = out_p[:B, :action_dim]
    value = out_p[:B, action_dim:action_dim + 1]
    return logits, value


def init_params(key, input_dim=2, hidden_dim=64, action_dim=4):
    """Deterministic init matching PyTorch nn.Linear's U(-1/sqrt(fan_in), +...)."""
    ks = jax.random.split(key, 8)

    def lin(kw, kb, fan_in, fan_out):
        bound = 1.0 / jnp.sqrt(jnp.float32(fan_in))
        w = jax.random.uniform(kw, (fan_in, fan_out), jnp.float32, -bound, bound)
        b = jax.random.uniform(kb, (fan_out,), jnp.float32, -bound, bound)
        return w, b

    w1, b1 = lin(ks[0], ks[1], input_dim, hidden_dim)
    w2, b2 = lin(ks[2], ks[3], hidden_dim, hidden_dim)
    wp, bp = lin(ks[4], ks[5], hidden_dim, action_dim)
    wv, bv = lin(ks[6], ks[7], hidden_dim, 1)
    return (w1, b1, w2, b2, wp, bp, wv, bv)


def _reference_forward(x, params):
    w1, b1, w2, b2, wp, bp, wv, bv = params
    h = jnp.maximum(x @ w1 + b1, 0.0)
    h = jnp.maximum(h @ w2 + b2, 0.0)
    return h @ wp + bp, h @ wv + bv


if __name__ == "__main__":
    key = jax.random.PRNGKey(0)
    k_x, k_p, k_big = jax.random.split(key, 3)

    B, INPUT_DIM, HIDDEN_DIM, ACTION_DIM = 2, 2, 64, 4
    x = jax.random.uniform(k_x, (B, INPUT_DIM), jnp.float32)  # (x_norm, y_norm)
    params = init_params(k_p, INPUT_DIM, HIDDEN_DIM, ACTION_DIM)
    packed = pack_params(params, input_dim=INPUT_DIM, hidden_dim=HIDDEN_DIM,
                         action_dim=ACTION_DIM)

    logits, value = policy_value_forward(
        x, packed, input_dim=INPUT_DIM, hidden_dim=HIDDEN_DIM, action_dim=ACTION_DIM
    )
    jax.block_until_ready((logits, value))

    ref_logits, ref_value = _reference_forward(x, params)
    assert logits.shape == (B, ACTION_DIM) and value.shape == (B, 1)
    assert jnp.allclose(logits, ref_logits, atol=1e-5, rtol=1e-5)
    assert jnp.allclose(value, ref_value, atol=1e-5, rtol=1e-5)

    # Exercise the batch-tiled / parallel-grid path (large PPO rollout batch).
    B2 = 600
    x_big = jax.random.uniform(k_big, (B2, INPUT_DIM), jnp.float32)
    logits2, value2 = policy_value_forward(
        x_big, packed, input_dim=INPUT_DIM, hidden_dim=HIDDEN_DIM, action_dim=ACTION_DIM
    )
    jax.block_until_ready((logits2, value2))
    ref_logits2, ref_value2 = _reference_forward(x_big, params)
    assert logits2.shape == (B2, ACTION_DIM) and value2.shape == (B2, 1)
    assert jnp.allclose(logits2, ref_logits2, atol=1e-5, rtol=1e-5)
    assert jnp.allclose(value2, ref_value2, atol=1e-5, rtol=1e-5)

    print("KERNEL_OK")
</pallas_src>

<mosaic_0001>
module attributes {stable_mosaic.version = 11 : i64} {
  func.func @_mlp_kernel(%arg0: i32, %arg1: memref<8x2xf32, #tpu.memory_space<vmem>>, %arg2: memref<8x128xf32, #tpu.memory_space<vmem>>, %arg3: memref<128x128xf32, #tpu.memory_space<vmem>>, %arg4: memref<128x128xf32, #tpu.memory_space<vmem>>, %arg5: memref<8x128xf32, #tpu.memory_space<vmem>>, %arg6: memref<8x128xf32, #tpu.memory_space<vmem>>) attributes {dimension_semantics = [#tpu.dimension_semantics<parallel>], iteration_bounds = array<i64: 1>, scalar_prefetch = 0 : i64, scratch_operands = 0 : i64, tpu.core_type = #tpu.core_type<tc>, window_params = [{transform_indices = @transform_0, window_bounds = array<i64: 8, 2>}, {pipeline_mode = #tpu.pipeline_mode<synchronous>, transform_indices = @transform_1, window_bounds = array<i64: 8, 128>}, {pipeline_mode = #tpu.pipeline_mode<synchronous>, transform_indices = @transform_2, window_bounds = array<i64: 128, 128>}, {pipeline_mode = #tpu.pipeline_mode<synchronous>, transform_indices = @transform_3, window_bounds = array<i64: 128, 128>}, {pipeline_mode = #tpu.pipeline_mode<synchronous>, transform_indices = @transform_4, window_bounds = array<i64: 8, 128>}, {transform_indices = @transform_5, window_bounds = array<i64: 8, 128>}]} {
    %c0 = arith.constant 0 : index
    %c0_0 = arith.constant 0 : index
    %0 = vector.load %arg1[%c0, %c0_0] : memref<8x2xf32, #tpu.memory_space<vmem>>, vector<8x2xf32>
    %c0_1 = arith.constant 0 : index
    %c0_2 = arith.constant 0 : index
    %1 = vector.load %arg2[%c0_1, %c0_2] : memref<8x128xf32, #tpu.memory_space<vmem>>, vector<8x128xf32>
    %c0_3 = arith.constant 0 : index
    %c0_4 = arith.constant 0 : index
    %2 = vector.load %arg5[%c0_3, %c0_4] : memref<8x128xf32, #tpu.memory_space<vmem>>, vector<8x128xf32>
    %3 = vector.extract_strided_slice %0 {offsets = [0, 0], sizes = [8, 1], strides = [1, 1]} : vector<8x2xf32> to vector<8x1xf32>
    %4 = vector.extract_strided_slice %1 {offsets = [0, 0], sizes = [1, 128], strides = [1, 1]} : vector<8x128xf32> to vector<1x128xf32>
    %5 = vector.broadcast %3 : vector<8x1xf32> to vector<8x128xf32>
    %6 = vector.broadcast %4 : vector<1x128xf32> to vector<8x128xf32>
    %7 = arith.mulf %5, %6 : vector<8x128xf32>
    %8 = vector.extract_strided_slice %0 {offsets = [0, 1], sizes = [8, 1], strides = [1, 1]} : vector<8x2xf32> to vector<8x1xf32>
    %9 = vector.extract_strided_slice %1 {offsets = [1, 0], sizes = [1, 128], strides = [1, 1]} : vector<8x128xf32> to vector<1x128xf32>
    %10 = vector.broadcast %8 : vector<8x1xf32> to vector<8x128xf32>
    %11 = vector.broadcast %9 : vector<1x128xf32> to vector<8x128xf32>
    %12 = arith.mulf %10, %11 : vector<8x128xf32>
    %13 = arith.addf %7, %12 : vector<8x128xf32>
    %14 = vector.extract_strided_slice %2 {offsets = [0, 0], sizes = [1, 128], strides = [1, 1]} : vector<8x128xf32> to vector<1x128xf32>
    %15 = vector.broadcast %14 : vector<1x128xf32> to vector<8x128xf32>
    %16 = arith.addf %13, %15 : vector<8x128xf32>
    %cst = arith.constant 0.000000e+00 : f32
    %17 = vector.broadcast %cst : f32 to vector<8x128xf32>
    %18 = arith.maximumf %16, %17 : vector<8x128xf32>
    %c0_5 = arith.constant 0 : index
    %c0_6 = arith.constant 0 : index
    %19 = vector.load %arg3[%c0_5, %c0_6] : memref<128x128xf32, #tpu.memory_space<vmem>>, vector<128x128xf32>
    %cst_7 = arith.constant dense<0.000000e+00> : vector<8x128xf32>
    %20 = tpu.matmul %18, %19, %cst_7 {dimension_numbers = #tpu.dot_dimension_numbers<[1], [0], [0], [1], [0, 0, 1, 1], [], []>} : vector<8x128xf32>, vector<128x128xf32>, vector<8x128xf32> -> vector<8x128xf32>
    %21 = vector.extract_strided_slice %2 {offsets = [1, 0], sizes = [1, 128], strides = [1, 1]} : vector<8x128xf32> to vector<1x128xf32>
    %22 = vector.broadcast %21 : vector<1x128xf32> to vector<8x128xf32>
    %23 = arith.addf %20, %22 : vector<8x128xf32>
    %cst_8 = arith.constant 0.000000e+00 : f32
    %24 = vector.broadcast %cst_8 : f32 to vector<8x128xf32>
    %25 = arith.maximumf %23, %24 : vector<8x128xf32>
    %c0_9 = arith.constant 0 : index
    %c0_10 = arith.constant 0 : index
    %26 = vector.load %arg4[%c0_9, %c0_10] : memref<128x128xf32, #tpu.memory_space<vmem>>, vector<128x128xf32>
    %cst_11 = arith.constant dense<0.000000e+00> : vector<8x128xf32>
    %27 = tpu.matmul %25, %26, %cst_11 {dimension_numbers = #tpu.dot_dimension_numbers<[1], [0], [0], [1], [0, 0, 1, 1], [], []>} : vector<8x128xf32>, vector<128x128xf32>, vector<8x128xf32> -> vector<8x128xf32>
    %28 = vector.extract_strided_slice %2 {offsets = [2, 0], sizes = [1, 128], strides = [1, 1]} : vector<8x128xf32> to vector<1x128xf32>
    %29 = vector.broadcast %28 : vector<1x128xf32> to vector<8x128xf32>
    %30 = arith.addf %27, %29 : vector<8x128xf32>
    %c0_12 = arith.constant 0 : index
    %c0_13 = arith.constant 0 : index
    %31 = vector.load %arg6[%c0_12, %c0_13] : memref<8x128xf32, #tpu.memory_space<vmem>>, vector<8x128xf32>
    tpu.vector_store %arg6[%c0_12, %c0_13], %30 {strides = array<i32>} : memref<8x128xf32, #tpu.memory_space<vmem>>, vector<8x128xf32>,
    return
  }
  func.func @transform_0(%arg0: i32) -> (i32, i32) {
    %c0_i32 = arith.constant 0 : i32
    %c0_i32_0 = arith.constant 0 : i32
    return %arg0, %c0_i32 : i32, i32
  }
  func.func @transform_1(%arg0: i32) -> (i32, i32) {
    %c0_i32 = arith.constant 0 : i32
    %c0_i32_0 = arith.constant 0 : i32
    %c0_i32_1 = arith.constant 0 : i32
    return %c0_i32, %c0_i32_0 : i32, i32
  }
  func.func @transform_2(%arg0: i32) -> (i32, i32) {
    %c0_i32 = arith.constant 0 : i32
    %c0_i32_0 = arith.constant 0 : i32
    %c0_i32_1 = arith.constant 0 : i32
    return %c0_i32, %c0_i32_0 : i32, i32
  }
  func.func @transform_3(%arg0: i32) -> (i32, i32) {
    %c0_i32 = arith.constant 0 : i32
    %c0_i32_0 = arith.constant 0 : i32
    %c0_i32_1 = arith.constant 0 : i32
    return %c0_i32, %c0_i32_0 : i32, i32
  }
  func.func @transform_4(%arg0: i32) -> (i32, i32) {
    %c0_i32 = arith.constant 0 : i32
    %c0_i32_0 = arith.constant 0 : i32
    %c0_i32_1 = arith.constant 0 : i32
    return %c0_i32, %c0_i32_0 : i32, i32
  }
  func.func @transform_5(%arg0: i32) -> (i32, i32) {
    %c0_i32 = arith.constant 0 : i32
    %c0_i32_0 = arith.constant 0 : i32
    return %arg0, %c0_i32 : i32, i32
  }
}

</mosaic_0001>

<bundles_post_ra>
// kernel: policy_value_forward.1
= control target key start
LH: loop header
LB: loop body
LE: loop exit
PB: predicated region body
PF: predicated region fallthrough
CT: control target
= control target key end

     0   :  { %10 = vsyncpa [#allocation3], 0  ;;  %s567_s0 = inlined_call_operand.vmem [shape: f32[8,2], index: 0, kind: input, shape index: {}]   ;;  %s568_s1 = inlined_call_operand.vmem [shape: f32[8,128], index: 1, kind: input, shape index: {}]   ;;  %s569_s2 = inlined_call_operand.hbm [shape: f32[128,128], index: 2, kind: input, shape index: {}]   ;;  %s570_s3 = inlined_call_operand.hbm [shape: f32[128,128], index: 3, kind: input, shape index: {}]   ;;  %s571_s4 = inlined_call_operand.vmem [shape: f32[8,128], index: 4, kind: input, shape index: {}]   ;;  %s572_s5 = inlined_call_operand.vmem [shape: f32[8,128], index: 5, kind: output, shape index: {}]  }
   0x1   :  { %11 = vsyncpa [#allocation5], 0  ;;  %s476_s18 = smov [#allocation2]   ;;  %s428_s22 = scalar_lea.hbm %s569_s2, 2048 }
   0x2   :  { %s21_s19 = sshll.u32 %s476_s18, 4  ;;  %p429_p0 = scmp.ne.s32.totalorder %s569_s2, %s428_s22  ;;  %s22_s19 = int_to_ptr.vmem [resolvable:$true] %s21_s19 }
   0x3   :  { %p432_p1 = scmp.lt.u32.totalorder %s428_s22, %s569_s2 }
   0x5   :  { %p434_p2 = pnand %p432_p1, %p429_p0 }
   0x7   :  { %437 = shalt.err (!%p434_p2)
}
   0x8   :  { %s438_s27 = scalar_lea.vmem %s22_s19, 2048  ;;  %p443_p4 = scmp.lt.s32.totalorder %s22_s19, %s22_s19 }
   0x9   :  { %p439_p3 = scmp.ne.s32.totalorder %s22_s19, %s438_s27  ;;  %p444_p5 = scmp.lt.s32.totalorder %s438_s27, %s438_s27 }
   0xb   :  { %p445_p6 = por %p444_p5, %p443_p4 }
   0xd   :  { %p446_p7 = pnand %p445_p6, %p439_p3 }
   0xf   :  { %449 = shalt.err (!%p446_p7)
}
  0x10   :  { %s477_s28 = smov 128   ;;  %s478_s29 = smov 8  }
  0x11   :  { %27 = dma.hbm_to_vmem [thread:$0]  %s569_s2, 2048, %s22_s19, [#allocation3], %s477_s28, %s477_s28, %s478_s29  }
  0x12   :  { %s479_s7 = smov [#allocation4]   ;;  %s450_s11 = scalar_lea.hbm %s570_s3, 2048 }
  0x13   :  { %s33_s8 = sshll.u32 %s479_s7, 4  ;;  %p451_p8 = scmp.ne.s32.totalorder %s570_s3, %s450_s11  ;;  %s34_s8 = int_to_ptr.vmem [resolvable:$true] %s33_s8 }
  0x14   :  { %p454_p9 = scmp.lt.u32.totalorder %s450_s11, %s570_s3 }
  0x16   :  { %p456_p10 = pnand %p454_p9, %p451_p8 }
  0x18   :  { %459 = shalt.err (!%p456_p10)
}
  0x19   :  { %s460_s16 = scalar_lea.vmem %s34_s8, 2048  ;;  %p465_p12 = scmp.lt.s32.totalorder %s34_s8, %s34_s8 }
  0x1a   :  { %p461_p11 = scmp.ne.s32.totalorder %s34_s8, %s460_s16  ;;  %p466_p13 = scmp.lt.s32.totalorder %s460_s16, %s460_s16 }
  0x1c   :  { %p467_p0 = por %p466_p13, %p465_p12 }
  0x1e   :  { %p468_p1 = pnand %p467_p0, %p461_p11 }
  0x20   :  { %471 = shalt.err (!%p468_p1)
}
  0x21   :  { %39 = dma.hbm_to_vmem [thread:$0]  %s570_s3, 2048, %s34_s8, [#allocation5], %s477_s28, %s477_s28, %s478_s29  }
  0x22   :  { %472 = dma.done.wait [#allocation3], 2048  }
  0x23   :  { %473 = vsyncadd [#allocation3], 4294965248 }
  0x24   :  { %474 = dma.done.wait [#allocation5], 2048  }
  0x25   :  { %475 = vsyncadd [#allocation5], 4294965248  ;;  %v480_v0 = vmov 0   ;;  %v481_v1 = vmov 0.0|0.0   ;;  %v48_v2 = vld [vmem:[%s567_s0] sm:$0xff]  ;;  %v78_v4 = vld [vmem:[#allocation2 + $0x8] sm:$0xff]  ;;  %v56_v50 = vlaneseq }
  0x26   :  { %426 = vset.pattern.permute.xlu0 %v480_v0  ;;  %369 = vmatprep.subr.bf16.mxu0 %v481_v1  ;;  %v77_v3 = vld [vmem:[#allocation2] sm:$0xff]  ;;  %v79_v6 = vld [vmem:[#allocation2 + $0x10] sm:$0xff]  ;;  %v80_v7 = vld [vmem:[#allocation2 + $0x18] sm:$0xff]  ;;  %v482_v11 = vmov 1   ;;  %vm483_vm0 = vmmov 0   ;;  %v484_v15 = vmov 0.0  }
  0x27   :  { %393 = vmatprep.subr.bf16.mxu1 %v481_v1  ;;  %53 = vperm.xlu0 %426, %v48_v2   ;;  %v370_v5 = vpack.c.bf16 %v78_v4, %v77_v3  ;;  %v373_v8 = vpack.c.bf16 %v80_v7, %v79_v6  ;;  %v81_v9 = vld [vmem:[#allocation2 + $0x20] sm:$0xff]  ;;  %v82_v10 = vld [vmem:[#allocation2 + $0x28] sm:$0xff]  ;;  %v83_v13 = vld [vmem:[#allocation2 + $0x30] sm:$0xff]  ;;  %v57_v51 = vshrl.u32 %v56_v50, 7 }
  0x28   :  { %v376_v12 = vpack.c.bf16 %v82_v10, %v81_v9  ;;  %v84_v14 = vld [vmem:[#allocation2 + $0x38] sm:$0xff]  ;;  %331 = vmatprep.mubr.msk.f32.mxu0 %vm483_vm0, %v484_v15  ;;  %366 = vmatprep.mubr.msk.f32.mxu1 %vm483_vm0, %v484_v15  ;;  %v85_v17 = vld [vmem:[#allocation2 + $0x40] sm:$0xff]  ;;  %v86_v18 = vld [vmem:[#allocation2 + $0x48] sm:$0xff] }
  0x29   :  { %371 = vmatpush3.bf16.msra.mxu0 %v370_v5  ;;  %v379_v16 = vpack.c.bf16 %v84_v14, %v83_v13  ;;  %v168_v19 = vld [vmem:[#allocation4] sm:$0xff]  ;;  %v169_v20 = vld [vmem:[#allocation4 + $0x8] sm:$0xff]  ;;  %v170_v21 = vld [vmem:[#allocation4 + $0x10] sm:$0xff]  ;;  %v382_v22 = vpack.c.bf16 %v86_v18, %v85_v17  ;;  %v58_v52 = vsub.s32 0, %v57_v51  ;;  %v67_v53 = vsub.s32 1, %v57_v51 }
  0x2a   :  { %372 = vmatprep.subr.bf16.mxu0 %v481_v1  ;;  %v394_v23 = vpack.c.bf16 %v169_v20, %v168_v19  ;;  %v171_v24 = vld [vmem:[#allocation4 + $0x18] sm:$0xff]  ;;  %v87_v25 = vld [vmem:[#allocation2 + $0x50] sm:$0xff]  ;;  %v172_v28 = vld [vmem:[#allocation4 + $0x20] sm:$0xff]  ;;  %v186_v10 = vsub.s32 2, %v57_v51 }
  0x2b   :  { %427 = vset.pattern.permute.xlu0 %v482_v11  ;;  %v88_v26 = vld [vmem:[#allocation2 + $0x58] sm:$0xff]  ;;  %v397_v27 = vpack.c.bf16 %v171_v24, %v170_v21  ;;  %v173_v29 = vld [vmem:[#allocation4 + $0x28] sm:$0xff]  ;;  %v89_v31 = vld [vmem:[#allocation2 + $0x60] sm:$0xff] }
  0x2c   :  { %62 = vperm.xlu0 %427, %v48_v2   ;;  %395 = vmatpush3.bf16.msra.mxu1 %v394_v23  ;;  %v385_v30 = vpack.c.bf16 %v88_v26, %v87_v25  ;;  %v90_v32 = vld [vmem:[#allocation2 + $0x68] sm:$0xff]  ;;  %v400_v33 = vpack.c.bf16 %v173_v29, %v172_v28  ;;  %v174_v34 = vld [vmem:[#allocation4 + $0x30] sm:$0xff]  ;;  %v175_v35 = vld [vmem:[#allocation4 + $0x38] sm:$0xff] }
  0x2d   :  { %374 = vmatpush3.bf16.msra.mxu0 %v373_v8  ;;  %396 = vmatprep.subr.bf16.mxu1 %v481_v1  ;;  %v388_v36 = vpack.c.bf16 %v90_v32, %v89_v31  ;;  %v91_v37 = vld [vmem:[#allocation2 + $0x70] sm:$0xff]  ;;  %v92_v38 = vld [vmem:[#allocation2 + $0x78] sm:$0xff]  ;;  %v403_v39 = vpack.c.bf16 %v175_v35, %v174_v34  ;;  %v176_v40 = vld [vmem:[#allocation4 + $0x40] sm:$0xff] }
  0x2e   :  { %375 = vmatprep.subr.bf16.mxu0 %v481_v1  ;;  %v177_v41 = vld [vmem:[#allocation4 + $0x48] sm:$0xff]  ;;  %v391_v42 = vpack.c.bf16 %v92_v38, %v91_v37  ;;  %v178_v44 = vld [vmem:[#allocation4 + $0x50] sm:$0xff]  ;;  %v179_v45 = vld [vmem:[#allocation4 + $0x58] sm:$0xff] }
  0x2f   :  { %v406_v43 = vpack.c.bf16 %v177_v41, %v176_v40  ;;  %v409_v46 = vpack.c.bf16 %v179_v45, %v178_v44  ;;  %v180_v47 = vld [vmem:[#allocation4 + $0x60] sm:$0xff]  ;;  %v181_v48 = vld [vmem:[#allocation4 + $0x68] sm:$0xff]  ;;  %v182_v2 = vld [vmem:[#allocation4 + $0x70] sm:$0xff] }
  0x30   :  { %398 = vmatpush3.bf16.msra.mxu1 %v397_v27  ;;  %v412_v49 = vpack.c.bf16 %v181_v48, %v180_v47  ;;  %v49_v54 = vld [vmem:[%s568_s1] sm:$0xff]  ;;  %v183_v3 = vld [vmem:[#allocation4 + $0x78] sm:$0xff] }
  0x31   :  { %377 = vmatpush3.bf16.msra.mxu0 %v376_v12  ;;  %399 = vmatprep.subr.bf16.mxu1 %v481_v1  ;;  %v59_v56 = vrot.slane %v49_v54, %v58_v52  ;;  %v68_v57 = vrot.slane %v49_v54, %v67_v53  ;;  %v50_v58 = vld [vmem:[%s571_s4] sm:$0xff]  ;;  %v415_v4 = vpack.c.bf16 %v183_v3, %v182_v2 }
  0x32   :  { %378 = vmatprep.subr.bf16.mxu0 %v481_v1  ;;  %v74_v62 = vrot.slane %v50_v58, %v58_v52  ;;  %v96_v5 = vrot.slane %v50_v58, %v67_v53  ;;  %v187_v11 = vrot.slane %v50_v58, %v186_v10 }
  0x34   :  { %401 = vmatpush3.bf16.msra.mxu1 %v400_v33 }
  0x35   :  { %380 = vmatpush3.bf16.msra.mxu0 %v379_v16  ;;  %402 = vmatprep.subr.bf16.mxu1 %v481_v1 }
  0x36   :  { %381 = vmatprep.subr.bf16.mxu0 %v481_v1 }
  0x38   :  { %404 = vmatpush3.bf16.msra.mxu1 %v403_v39 }
  0x39   :  { %383 = vmatpush3.bf16.msra.mxu0 %v382_v22  ;;  %405 = vmatprep.subr.bf16.mxu1 %v481_v1 }
  0x3a   :  { %384 = vmatprep.subr.bf16.mxu0 %v481_v1 }
  0x3c   :  { %407 = vmatpush3.bf16.msra.mxu1 %v406_v43 }
  0x3d   :  { %386 = vmatpush3.bf16.msra.mxu0 %v385_v30  ;;  %408 = vmatprep.subr.bf16.mxu1 %v481_v1 }
  0x3e   :  { %387 = vmatprep.subr.bf16.mxu0 %v481_v1 }
  0x40   :  { %410 = vmatpush3.bf16.msra.mxu1 %v409_v46 }
  0x41   :  { %389 = vmatpush3.bf16.msra.mxu0 %v388_v36  ;;  %411 = vmatprep.subr.bf16.mxu1 %v481_v1 }
  0x42   :  { %390 = vmatprep.subr.bf16.mxu0 %v481_v1 }
  0x44   :  { %413 = vmatpush3.bf16.msra.mxu1 %v412_v49 }
  0x45   :  { %392 = vmatpush3.bf16.msra.mxu0 %v391_v42  ;;  %414 = vmatprep.subr.bf16.mxu1 %v481_v1 }
  0x48   :  { %416 = vmatpush3.bf16.msra.mxu1 %v415_v4 }
  0xa6   :  { %v54_v55 = vpop.permute.xlu0 %53 }
  0xa7   :  { %v60_v60 = vmul.f32 %v59_v56, %v54_v55 }
  0xab   :  { %v63_v59 = vpop.permute.xlu0 %62 }
  0xac   :  { %v69_v61 = vmul.f32 %v68_v57, %v63_v59 }
  0xae   :  { %v70_v63 = vadd.f32 %v69_v61, %v60_v60 }
  0xb0   :  { %v75_v0 = vadd.f32 %v74_v62, %v70_v63 }
  0xb2   :  { %v76_v1 = vmax.f32 %v75_v0, 0.0 }
  0xb4   :  { %332 = vmatmul.mubr.f32.vlgmr.msra.gmra.mrb[0].mxu0 %v76_v1 }
 0x187   :  { %v163_v6 = vpop.f32.mrb[0].mxu0 }
 0x188   :  { %v164_v7 = vadd.f32 %v163_v6, %v96_v5  ;;  %v333_v8 = vpop.f32.mrb[1].mxu0 }
 0x18a   :  { %v167_v9 = vmax.f32 %v164_v7, 0.0 }
 0x18c   :  { %367 = vmatmul.mubr.f32.vlgmr.msra.gmra.mrb[0].mxu1 %v167_v9 }
 0x25f   :  { %v254_v12 = vpop.f32.mrb[0].mxu1 }
 0x260   :  { %v255_v13 = vadd.f32 %v254_v12, %v187_v11  ;;  %v368_v14 = vpop.f32.mrb[1].mxu1 }
 0x262   :  { %258 = vst [vmem:[%s572_s5] sm:$0xff] %v255_v13 }
 0x263   :  { %263 = vsyncpa [#allocation3], 1 }
 0x264   :  { %264 = vsyncpa [#allocation5], 1 }

</bundles_post_ra>
